<compile_context>
chip_gen: v5e
topology: v5e:2x2
jax: 0.10.0
libtpu: 0.0.40
codegen_flags: <defaults>
</compile_context>

<pallas_src>
import functools

import jax
import jax.numpy as jnp
from jax import lax
from jax.experimental import pallas as pl
from jax.experimental.pallas import tpu as pltpu


_VMEM_LIMIT_BYTES = 32 * 1024 * 1024     # safe scoped-VMEM limit on v5e/v6e/v7x
_DEFAULT_BLOCK_BYTES = 2 * 1024 * 1024   # ~2 MiB per input block (~HBM roofline)


def _sublane_pack(*dtypes):
    """Row multiple required by the narrowest dtype's sublane packing."""
    pack = 8
    for dt in dtypes:
        pack = max(pack, 8 * max(1, 4 // jnp.dtype(dt).itemsize))
    return pack


def _choose_tile_rows(n_rows, width, itemsize, pack, target_block_bytes,
                      vmem_budget_bytes, max_tile_rows=None):
    """Pick a row-tile: byte-targeted, VMEM-bounded, sublane-packed."""
    row_in = width * itemsize
    row_f32 = width * 4
    # 2 inputs x 2 pipeline buffers (input dtype) + ~6 block-sized f32 temps.
    per_row = 4 * row_in + 6 * row_f32
    rows = min(target_block_bytes // max(1, row_in),
               vmem_budget_bytes // max(1, per_row))
    if max_tile_rows is not None:
        rows = min(rows, max_tile_rows)
    rows = max(pack, (rows // pack) * pack)
    if rows >= n_rows:
        return n_rows   # single full-extent tile (always a legal block shape)
    return rows


def _row_mask(tile_rows, block_idx, n_valid_rows):
    row = lax.broadcasted_iota(jnp.int32, (tile_rows, 1), 0) + block_idx * tile_rows
    return row < n_valid_rows


def _accumulate(acc_ref, elem, tile_rows):
    if tile_rows % 8 == 0:
        # Group-of-8 sublane pre-reduction: pure VPU adds, acc stays (8, W).
        acc_ref[...] += jnp.sum(
            elem.reshape(tile_rows // 8, 8, elem.shape[-1]), axis=0)
    else:
        # Tiny / full-extent tile whose row count is not a multiple of 8.
        acc_ref[...] += jnp.sum(elem, axis=0, keepdims=True)


def _finalize(acc_ref, out_ref, inv_norm):
    total = jnp.sum(acc_ref[...]) * inv_norm
    out_ref[...] = jnp.broadcast_to(total, out_ref.shape).astype(out_ref.dtype)


def _soft_ce_sum_kernel(x_ref, p_ref, out_ref, acc_ref, *, tile_rows,
                        n_valid_rows, inv_norm, needs_mask):
    i = pl.program_id(0)

    @pl.when(i == 0)
    def _init():
        acc_ref[...] = jnp.zeros_like(acc_ref)

    x = x_ref[...].astype(jnp.float32)
    p = p_ref[...].astype(jnp.float32)
    if needs_mask:
        mask = _row_mask(tile_rows, i, n_valid_rows)
        x = jnp.where(mask, x, 0.0)   # masked rows: finite lse, p == 0 -> elem 0
        p = jnp.where(mask, p, 0.0)

    # Soft-target cross entropy per element: p_ij * (logsumexp(x_i) - x_ij).
    m = jnp.max(x, axis=-1, keepdims=True)
    lse = m + jnp.log(jnp.sum(jnp.exp(x - m), axis=-1, keepdims=True))
    elem = p * (lse - x)

    _accumulate(acc_ref, elem, tile_rows)

    @pl.when(i == pl.num_programs(0) - 1)
    def _done():
        _finalize(acc_ref, out_ref, inv_norm)


def _sq_err_sum_kernel(u_ref, q_ref, out_ref, acc_ref, *, tile_rows,
                       n_valid_rows, inv_norm, needs_mask):
    i = pl.program_id(0)

    @pl.when(i == 0)
    def _init():
        acc_ref[...] = jnp.zeros_like(acc_ref)

    d = u_ref[...].astype(jnp.float32) - q_ref[...].astype(jnp.float32)
    if needs_mask:
        d = jnp.where(_row_mask(tile_rows, i, n_valid_rows), d, 0.0)
    elem = d * d

    _accumulate(acc_ref, elem, tile_rows)

    @pl.when(i == pl.num_programs(0) - 1)
    def _done():
        _finalize(acc_ref, out_ref, inv_norm)


def _run_row_reduction(kernel_body, a, b, n_rows, width, inv_norm, *,
                       tile_rows, transcendentals):
    grid = pl.cdiv(n_rows, tile_rows)
    needs_mask = (n_rows % tile_rows) != 0
    acc_rows = 8 if tile_rows % 8 == 0 else 1

    kern = functools.partial(kernel_body, tile_rows=tile_rows,
                             n_valid_rows=n_rows, inv_norm=float(inv_norm),
                             needs_mask=needs_mask)
    bytes_accessed = int(a.size * a.dtype.itemsize
                         + b.size * b.dtype.itemsize + 8 * 128 * 4)
    out = pl.pallas_call(
        kern,
        out_shape=jax.ShapeDtypeStruct((8, 128), jnp.float32),
        grid_spec=pltpu.PrefetchScalarGridSpec(
            num_scalar_prefetch=0,
            grid=(grid,),
            in_specs=[
                pl.BlockSpec((tile_rows, width), lambda i: (i, 0)),
                pl.BlockSpec((tile_rows, width), lambda i: (i, 0)),
            ],
            out_specs=pl.BlockSpec((8, 128), lambda i: (0, 0)),
            scratch_shapes=[pltpu.VMEM((acc_rows, width), jnp.float32)],
        ),
        compiler_params=pltpu.CompilerParams(
            dimension_semantics=("arbitrary",),
            vmem_limit_bytes=_VMEM_LIMIT_BYTES,
        ),
        cost_estimate=pl.CostEstimate(
            flops=int(12 * n_rows * width),
            transcendentals=int(transcendentals),
            bytes_accessed=bytes_accessed,
        ),
    )(a, b)
    return out[0, 0]


def mixmatch_loss(X, U, p, q, *, lambda_u=100,
                  target_block_bytes=_DEFAULT_BLOCK_BYTES, max_tile_rows=None):
    """X:[Bx,C] labeled logits, p:[Bx,C] soft labels, U:[Bu,C] unlabeled
    logits, q:[Bu,C] guessed labels -> scalar loss = soft-CE + MSE."""
    del lambda_u  # Unused by the reference forward (see module-level TODO).
    Bx, C = X.shape
    Bu, Cu = U.shape
    if p.shape != (Bx, C) or q.shape != (Bu, Cu) or C != Cu:
        raise ValueError("shape mismatch between logits and targets")

    vmem_budget = _VMEM_LIMIT_BYTES - 8 * 1024 * 1024  # pipeline/temps headroom

    # --- labeled half: soft-target cross entropy (needs whole rows of C) -----
    pack_x = _sublane_pack(X.dtype, p.dtype)
    tile_x = _choose_tile_rows(Bx, C, max(X.dtype.itemsize, p.dtype.itemsize),
                               pack_x, target_block_bytes, vmem_budget,
                               max_tile_rows)
    ce = _run_row_reduction(_soft_ce_sum_kernel, X, p, Bx, C, 1.0 / Bx,
                            tile_rows=tile_x, transcendentals=Bx * C + Bx)

    # --- unlabeled half: MSE (elementwise -> lane-dense view when possible) --
    n_u = Bu * C
    if (C % 128 != 0) and (n_u % 128 == 0) and (n_u // 128 >= 8):
        rows_u, width_u = n_u // 128, 128
        Uv, qv = U.reshape(rows_u, width_u), q.reshape(rows_u, width_u)
    else:
        Uv, qv, rows_u, width_u = U, q, Bu, C
    pack_u = _sublane_pack(U.dtype, q.dtype)
    tile_u = _choose_tile_rows(rows_u, width_u,
                               max(U.dtype.itemsize, q.dtype.itemsize),
                               pack_u, target_block_bytes, vmem_budget,
                               max_tile_rows)
    mse = _run_row_reduction(_sq_err_sum_kernel, Uv, qv, rows_u, width_u,
                             1.0 / n_u, tile_rows=tile_u, transcendentals=0)

    return ce + mse


def mixmatch_loss_ref(X, U, p, q):
    """Plain-JAX reference for sanity checking."""
    logp = jax.nn.log_softmax(X.astype(jnp.float32), axis=-1)
    ce = jnp.mean(-jnp.sum(p.astype(jnp.float32) * logp, axis=-1))
    mse = jnp.mean((U.astype(jnp.float32) - q.astype(jnp.float32)) ** 2)
    return ce + mse


if __name__ == "__main__":
    key = jax.random.PRNGKey(0)

    def make(bx, bu, c, dtype):
        sub = jax.random.fold_in(key, bx * 131 + bu * 7 + c)
        kx, ku, kp, kq = jax.random.split(sub, 4)
        X = jax.random.normal(kx, (bx, c), dtype=jnp.float32).astype(dtype)
        U = jax.random.normal(ku, (bu, c), dtype=jnp.float32).astype(dtype)
        p = jax.nn.softmax(jax.random.normal(kp, (bx, c)), axis=-1).astype(dtype)
        q = jax.nn.softmax(jax.random.normal(kq, (bu, c)), axis=-1).astype(dtype)
        return X, U, p, q

    checks = []

    # A) f32, Bx != Bu.  Small tiles exercise multi-tile accumulation and the
    #    partial-tile row mask; the MSE half takes the lane-dense [16,128] view.
    X, U, p, q = make(40, 64, 32, jnp.float32)
    checks.append((mixmatch_loss(X, U, p, q, max_tile_rows=16),
                   mixmatch_loss_ref(X, U, p, q), 1e-5))
    checks.append((mixmatch_loss(X, U, p, q),            # default (large) tiles
                   mixmatch_loss_ref(X, U, p, q), 1e-5))

    # B) Lane-dense MSE view with a ragged row count (15 rows of 128): covers
    #    both the masked partial tile (tile=8) and the full-extent tile whose
    #    row count is not a multiple of 8 (keepdims accumulator path).
    X, U, p, q = make(24, 40, 48, jnp.float32)
    checks.append((mixmatch_loss(X, U, p, q, max_tile_rows=8),
                   mixmatch_loss_ref(X, U, p, q), 1e-5))
    checks.append((mixmatch_loss(X, U, p, q),
                   mixmatch_loss_ref(X, U, p, q), 1e-5))

    # C) bf16 inputs streamed without any wrapper upcast (sublane packing 16).
    X, U, p, q = make(32, 32, 32, jnp.bfloat16)
    checks.append((mixmatch_loss(X, U, p, q),
                   mixmatch_loss_ref(X, U, p, q), 1e-4))

    for got, want, tol in checks:
        got = jax.block_until_ready(got)
        assert jnp.allclose(got, want, rtol=tol, atol=tol), (got, want)

    print("KERNEL_OK")
</pallas_src>

<mosaic_0001>
module attributes {stable_mosaic.version = 11 : i64} {
  func.func @_soft_ce_sum_kernel(%arg0: i32, %arg1: memref<16x32xf32, #tpu.memory_space<vmem>>, %arg2: memref<16x32xf32, #tpu.memory_space<vmem>>, %arg3: memref<8x128xf32, #tpu.memory_space<vmem>>, %arg4: memref<8x32xf32, #tpu.memory_space<vmem>>) attributes {dimension_semantics = [#tpu.dimension_semantics<arbitrary>], iteration_bounds = array<i64: 3>, scalar_prefetch = 0 : i64, scratch_operands = 1 : i64, tpu.core_type = #tpu.core_type<tc>, window_params = [{transform_indices = @transform_0, window_bounds = array<i64: 16, 32>}, {transform_indices = @transform_1, window_bounds = array<i64: 16, 32>}, {pipeline_mode = #tpu.pipeline_mode<synchronous>, transform_indices = @transform_2, window_bounds = array<i64: 8, 128>}]} {
    %c0_i32 = arith.constant 0 : i32
    %0 = arith.cmpi eq, %arg0, %c0_i32 : i32
    %1 = arith.extui %0 : i1 to i32
    %c0_i32_0 = arith.constant 0 : i32
    %2 = arith.cmpi ne, %1, %c0_i32_0 : i32
    scf.if %2 {
      %cst_13 = arith.constant 0.000000e+00 : f32
      %39 = vector.broadcast %cst_13 : f32 to vector<8x32xf32>
      %c0_14 = arith.constant 0 : index
      %c0_15 = arith.constant 0 : index
      %40 = vector.load %arg4[%c0_14, %c0_15] : memref<8x32xf32, #tpu.memory_space<vmem>>, vector<8x32xf32>
      tpu.vector_store %arg4[%c0_14, %c0_15], %39 {strides = array<i32>} : memref<8x32xf32, #tpu.memory_space<vmem>>, vector<8x32xf32>,
    } else {
    }
    %c0 = arith.constant 0 : index
    %c0_1 = arith.constant 0 : index
    %3 = vector.load %arg1[%c0, %c0_1] : memref<16x32xf32, #tpu.memory_space<vmem>>, vector<16x32xf32>
    %c0_2 = arith.constant 0 : index
    %c0_3 = arith.constant 0 : index
    %4 = vector.load %arg2[%c0_2, %c0_3] : memref<16x32xf32, #tpu.memory_space<vmem>>, vector<16x32xf32>
    %5 = tpu.iota {dimensions = array<i32: 0>} : vector<16x1xi32>
    %c16_i32 = arith.constant 16 : i32
    %6 = arith.muli %arg0, %c16_i32 : i32
    %7 = vector.broadcast %6 : i32 to vector<16x1xi32>
    %8 = arith.addi %5, %7 : vector<16x1xi32>
    %c40_i32 = arith.constant 40 : i32
    %9 = vector.broadcast %c40_i32 : i32 to vector<16x1xi32>
    %10 = arith.cmpi slt, %8, %9 : vector<16x1xi32>
    %cst = arith.constant 0.000000e+00 : f32
    %11 = vector.shape_cast %10 : vector<16x1xi1> to vector<16x1xi1>
    %12 = vector.broadcast %11 : vector<16x1xi1> to vector<16x32xi1>
    %13 = vector.broadcast %cst : f32 to vector<16x32xf32>
    %14 = arith.select %12, %3, %13 : vector<16x32xi1>, vector<16x32xf32>
    %cst_4 = arith.constant 0.000000e+00 : f32
    %15 = vector.shape_cast %10 : vector<16x1xi1> to vector<16x1xi1>
    %16 = vector.broadcast %15 : vector<16x1xi1> to vector<16x32xi1>
    %17 = vector.broadcast %cst_4 : f32 to vector<16x32xf32>
    %18 = arith.select %16, %4, %17 : vector<16x32xi1>, vector<16x32xf32>
    %cst_5 = arith.constant dense<0xFF800000> : vector<16xf32>
    %19 = vector.multi_reduction <maximumf>, %14, %cst_5 [1] : vector<16x32xf32> to vector<16xf32>
    %20 = vector.shape_cast %19 : vector<16xf32> to vector<16x1xf32>
    %21 = vector.broadcast %20 : vector<16x1xf32> to vector<16x32xf32>
    %22 = arith.subf %14, %21 : vector<16x32xf32>
    %23 = math.exp %22 : vector<16x32xf32>
    %cst_6 = arith.constant dense<0.000000e+00> : vector<16xf32>
    %24 = vector.multi_reduction <add>, %23, %cst_6 [1] : vector<16x32xf32> to vector<16xf32>
    %25 = vector.shape_cast %24 : vector<16xf32> to vector<16x1xf32>
    %26 = math.log %25 : vector<16x1xf32>
    %27 = arith.addf %20, %26 : vector<16x1xf32>
    %28 = vector.broadcast %27 : vector<16x1xf32> to vector<16x32xf32>
    %29 = arith.subf %28, %14 : vector<16x32xf32>
    %30 = arith.mulf %18, %29 : vector<16x32xf32>
    %c0_7 = arith.constant 0 : index
    %c0_8 = arith.constant 0 : index
    %31 = vector.load %arg4[%c0_7, %c0_8] : memref<8x32xf32, #tpu.memory_space<vmem>>, vector<8x32xf32>
    %32 = vector.shape_cast %30 : vector<16x32xf32> to vector<2x8x32xf32>
    %cst_9 = arith.constant dense<0.000000e+00> : vector<8x32xf32>
    %33 = vector.multi_reduction <add>, %32, %cst_9 [0] : vector<2x8x32xf32> to vector<8x32xf32>
    %34 = arith.addf %31, %33 : vector<8x32xf32>
    %c0_10 = arith.constant 0 : index
    %c0_11 = arith.constant 0 : index
    %35 = vector.load %arg4[%c0_10, %c0_11] : memref<8x32xf32, #tpu.memory_space<vmem>>, vector<8x32xf32>
    tpu.vector_store %arg4[%c0_10, %c0_11], %34 {strides = array<i32>} : memref<8x32xf32, #tpu.memory_space<vmem>>, vector<8x32xf32>,
    %c2_i32 = arith.constant 2 : i32
    %36 = arith.cmpi eq, %arg0, %c2_i32 : i32
    %37 = arith.extui %36 : i1 to i32
    %c0_i32_12 = arith.constant 0 : i32
    %38 = arith.cmpi ne, %37, %c0_i32_12 : i32
    scf.if %38 {
      %c0_13 = arith.constant 0 : index
      %c0_14 = arith.constant 0 : index
      %39 = vector.load %arg4[%c0_13, %c0_14] : memref<8x32xf32, #tpu.memory_space<vmem>>, vector<8x32xf32>
      %40 = vector.shape_cast %39 : vector<8x32xf32> to vector<1x8x32xf32>
      %cst_15 = arith.constant dense<0.000000e+00> : vector<1xf32>
      %41 = vector.multi_reduction <add>, %40, %cst_15 [1, 2] : vector<1x8x32xf32> to vector<1xf32>
      %42 = vector.shape_cast %41 : vector<1xf32> to vector<1x1x1xf32>
      %43 = vector.extract %42[0, 0, 0] : f32 from vector<1x1x1xf32>
      %cst_16 = arith.constant 2.500000e-02 : f32
      %44 = arith.mulf %43, %cst_16 : f32
      %45 = vector.broadcast %44 : f32 to vector<8x128xf32>
      %c0_17 = arith.constant 0 : index
      %c0_18 = arith.constant 0 : index
      %46 = vector.load %arg3[%c0_17, %c0_18] : memref<8x128xf32, #tpu.memory_space<vmem>>, vector<8x128xf32>
      tpu.vector_store %arg3[%c0_17, %c0_18], %45 {strides = array<i32>} : memref<8x128xf32, #tpu.memory_space<vmem>>, vector<8x128xf32>,
    } else {
    }
    return
  }
  func.func @transform_0(%arg0: i32) -> (i32, i32) {
    %c0_i32 = arith.constant 0 : i32
    %c0_i32_0 = arith.constant 0 : i32
    return %arg0, %c0_i32 : i32, i32
  }
  func.func @transform_1(%arg0: i32) -> (i32, i32) {
    %c0_i32 = arith.constant 0 : i32
    %c0_i32_0 = arith.constant 0 : i32
    return %arg0, %c0_i32 : i32, i32
  }
  func.func @transform_2(%arg0: i32) -> (i32, i32) {
    %c0_i32 = arith.constant 0 : i32
    %c0_i32_0 = arith.constant 0 : i32
    %c0_i32_1 = arith.constant 0 : i32
    return %c0_i32, %c0_i32_0 : i32, i32
  }
}

</mosaic_0001>

<bundles_post_ra>
// kernel: tpu_custom_call.1
= control target key start
LH: loop header
LB: loop body
LE: loop exit
PB: predicated region body
PF: predicated region fallthrough
CT: control target
= control target key end

     0   :  { %7 = vsyncpa [#allocation4], 0  ;;  %s432_s9 = smov 0   ;;  %s475_s0 = inlined_call_operand.vmem [shape: f32[40,32], index: 0, kind: input, shape index: {}]   ;;  %s476_s1 = inlined_call_operand.vmem [shape: f32[40,32], index: 1, kind: input, shape index: {}]   ;;  %s477_s2 = inlined_call_operand.hbm [shape: f32[8,128], index: 2, kind: output, shape index: {}]  }
   0x1 LB: > { %s438_s10 = sadd.s32 4294967295, %s413_s9   ;;  %p337_p0 = scmp.ge.s32.totalorder %s413_s9, 1  ;;  %s413_s9 = sphi %s432_s9, %s13_s9  }
   0x2   : > { %p136_p1 = scmp.lt.s32.totalorder %s413_s9, 4 }
   0x4   : > { %p137_p2 = pnand %p337_p0, %p136_p1 }
   0x5   : > { %s338_s11 = sshll.u32 (!%p137_p2), %s438_s10, 1  ;;  %p342_p4 = scmp.ne.s32.totalorder (!%p137_p2), %s438_s10, 0 }
   0x6   : > { %140 = sbr.rel (%p137_p2) target bundleno = 495 (0x1ef), region = 28  ;;  %p171_p3 = scmp.lt.s32.totalorder (!%p137_p2), %s338_s11, 4 }
   0xb   : > { %s479_s11 = smov (!%p171_p3, %s338_s11), 4  ;;  %197 = sbr.rel (%p342_p4) target bundleno = 18 (0x12), region = 32 }
   0xc   : > { %s339_s12 = sshll.u32 %s479_s11, 3 }
   0xd   : > { %s174_s15 = scalar_lea.vmem %s475_s0, %s339_s12  ;;  %s449_s18 = scalar_lea.vmem %s476_s1, %s339_s12 }
  0x10   : > { %vm198_vm0 = vcmask 261120   ;;  %v415_v0 = vmov 0.0  }
  0x11   : > { %199 = vst.msk [vmem:[#allocation2] sm:$0xff] %vm198_vm0, %v415_v0 }
  0x12 PF: > { %v204_v1 = vlaneseq  ;;  %s343_s19 = sshll.u32 %s438_s10, 4  ;;  %v200_v4 = vld [vmem:[%s174_s15] sm:$0xff]  ;;  %vm221_vm1 = vcmask 261120   ;;  %v201_v10 = vld [vmem:[%s174_s15 + $0x8] sm:$0xff]  ;;  %p344_p5 = scmp.ne.s32.totalorder %s438_s10, 2 }
  0x13   : > { %v208_v2 = vstv %s343_s19  ;;  %v202_v28 = vld [vmem:[%s449_s18] sm:$0xff]  ;;  %v203_v30 = vld [vmem:[%s449_s18 + $0x8] sm:$0xff] }
  0x14   : > { %v205_v3 = vshrl.u32 %v204_v1, 7 }
  0x16   : > { %v209_v5 = vadd.s32 %v208_v2, %v205_v3  ;;  %v206_v6 = vadd.s32 8, %v205_v3 }
  0x18   : > { %vm211_vm2 = vcmp.lt.s32.totalorder %v209_v5, 40  ;;  %v210_v7 = vadd.s32 %v208_v2, %v206_v6  ;;  %v250_v40 = vld [vmem:[#allocation2] sm:$0xff] }
  0x19   : > { %v217_v8 = vsel %vm211_vm2, %v200_v4, 0.0  ;;  %v219_v33 = vsel %vm211_vm2, %v202_v28, 0.0 }
  0x1a   : > { %v222_v9 = vsel %vm221_vm1, %v217_v8, -inf  ;;  %vm212_vm3 = vcmp.lt.s32.totalorder %v210_v7, 40 }
  0x1b   : > { %223 = vmax.xlane.f32.xlu0 %v222_v9  ;;  %v218_v11 = vsel %vm212_vm3, %v201_v10, 0.0  ;;  %v220_v35 = vsel %vm212_vm3, %v203_v30, 0.0 }
  0x1c   : > { %v225_v12 = vsel %vm221_vm1, %v218_v11, -inf }
  0x23   : > { %226 = vmax.xlane.f32.xlu0 %v225_v12 }
  0x8e   : > { %v224_v13 = vpop.xlane.xlu0 %223 }
  0x8f   : > { %v228_v14 = vsub.f32 %v217_v8, %v224_v13 }
  0x91   : > { %v230_v15 = vmul.f32 1.442695, %v228_v14 }
  0x93   : > { %367 = vpow2.f32 %v230_v15 }
  0x96   : > { %v227_v16 = vpop.xlane.xlu0 %226 }
  0x97   : > { %v229_v17 = vsub.f32 %v218_v11, %v227_v16 }
  0x99   : > { %v368_v18 = vpop.eup %367  ;;  %v232_v19 = vmul.f32 1.442695, %v229_v17 }
  0x9a   : > { %v234_v20 = vsel %vm221_vm1, %v368_v18, 0.0 }
  0x9b   : > { %369 = vpow2.f32 %v232_v19  ;;  %235 = vadd.xlane.f32.xlu1 %v234_v20 }
  0xa1   : > { %v370_v21 = vpop.eup %369 }
  0xa2   : > { %v237_v22 = vsel %vm221_vm1, %v370_v21, 0.0 }
  0xa3   : > { %238 = vadd.xlane.f32.xlu1 %v237_v22 }
 0x10e   : > { %v236_v23 = vpop.xlane.xlu1 %235 }
 0x10f   : > { %371 = vlog2.f32 %v236_v23 }
 0x115   : > { %v372_v24 = vpop.eup %371 }
 0x116   : > { %v241_v25 = vmul.f32 0.6931472, %v372_v24  ;;  %v239_v26 = vpop.xlane.xlu1 %238 }
 0x117   : > { %373 = vlog2.f32 %v239_v26 }
 0x118   : > { %v244_v27 = vadd.f32 %v241_v25, %v224_v13 }
 0x11a   : > { %v246_v31 = vsub.f32 %v244_v27, %v217_v8 }
 0x11c   : > { %v248_v36 = vmul.f32 %v246_v31, %v219_v33 }
 0x11d   : > { %v374_v29 = vpop.eup %373 }
 0x11e   : > { %v243_v32 = vmul.f32 0.6931472, %v374_v29  ;;  %v251_v39 = vsel %vm221_vm1, %v248_v36, 0.0 }
 0x120   : > { %v245_v34 = vadd.f32 %v243_v32, %v227_v16 }
 0x122   : > { %v247_v37 = vsub.f32 %v245_v34, %v218_v11 }
 0x124   : > { %v249_v38 = vmul.f32 %v247_v37, %v220_v35 }
 0x126   : > { %v252_v41 = vsel %vm221_vm1, %v249_v38, 0.0 }
 0x127   : > { %v253_v42 = vadd.f32 %v252_v41, %v251_v39  ;;  %259 = sbr.rel (%p344_p5) target bundleno = 490 (0x1ea), region = 36 }
 0x129   : > { %v254_v43 = vadd.f32 %v253_v42, %v250_v40 }
 0x12b   : > { %255 = vst.msk [vmem:[#allocation2] sm:$0xff] %vm221_vm1, %v254_v43 }
 0x132   : > { %v260_v44 = vld [vmem:[#allocation2] sm:$0xff] }
 0x133   : > { %v261_v45 = vsel %vm221_vm1, %v260_v44, 0.0 }
 0x134   : > { %262 = vadd.xlane.f32.xlu0 %v261_v45 }
 0x1a7   : > { %v263_v46 = vpop.xlane.xlu0 %262 }
 0x1a8   : > { %v264_v47 = vrot.slane %v263_v46, 4 }
 0x1aa   : > { %v265_v48 = vadd.f32 %v264_v47, %v263_v46 }
 0x1ac   : > { %v266_v49 = vrot.slane %v265_v48, 2 }
 0x1ae   : > { %v267_v50 = vadd.f32 %v266_v49, %v265_v48 }
 0x1b0   : > { %v268_v51 = vrot.slane %v267_v50, 1 }
 0x1b2   : > { %v269_v52 = vadd.f32 %v268_v51, %v267_v50 }
 0x1b4   : > { %349 = vpush %v269_v52 }
 0x1e5   : > { %s350_s20 = spop %349 }
 0x1e6   : > { %s271_s21 = smul.f32 0.025, %s350_s20 }
 0x1e8   : > { %v272_v53 = vstv %s271_s21 }
 0x1e9   : > { %273 = vst [vmem:[#allocation3] sm:$0xff] %v272_v53 }
 0x1ea PF: > { %p355_p6 = scmp.eq.s32.totalorder %s438_s10, 2  ;;  %s416_s22 = smov [#allocation3]  }
 0x1eb   : > { %s280_s23 = sshll.u32 %s416_s22, 4  ;;  %s282_s26 = sshll.u32 %s477_s2, 4  ;;  %s281_s23 = int_to_ptr.vmem [resolvable:$true] %s280_s23  ;;  %s283_s26 = int_to_ptr.hbm [resolvable:$true] %s282_s26 }
 0x1ec   : > { %352 = dma.vmem_to_hbm [thread:$0]  (%p355_p6), %s281_s23, 128, %s283_s26, [#allocation4]  }
 0x1ed   : > { %408 = dma.done.wait (%p355_p6), [#allocation4], 128  }
 0x1ee   : > { %410 = vsyncadd (%p355_p6), [#allocation4], 4294967168 }
 0x1ef PF: > { %s13_s9 = sadd.s32 1, %s413_s9  }
 0x1f0   : > { %p10_p7 = scmp.ge.s32.totalorder %s13_s9, 5  }
 0x1f2   :  { %12 = sbr.rel (!%p10_p7) target bundleno = 1 (0x1), region = 66 }
 0x1f7   :  { %296 = vsyncpa [#allocation4], 1 }
 0x1f8   :  { %298 = vsyncpa [#allocation4 + $0x1], 1 }

</bundles_post_ra>
